<compile_context>
chip_gen: v6e
topology: v6e:2x2x1
jax: 0.10.0
libtpu: 0.0.40
codegen_flags: <defaults>
</compile_context>

<pallas_src>
import functools

import jax
import jax.numpy as jnp
from jax.experimental import pallas as pl
from jax.experimental.pallas import tpu as pltpu


def _round_up(x, m):
    return (x + m - 1) // m * m


# Probe once whether this Pallas build supports per-BlockSpec buffer counts
# (used to single-buffer the grid-resident W / b operands).
try:
    pl.BlockSpec((8, 128), lambda i: (0, 0), pipeline_mode=pl.Buffered(1))
    _HAS_PIPELINE_MODE = True
except Exception:  # pragma: no cover - older Pallas builds
    _HAS_PIPELINE_MODE = False
_RESIDENT_BUFS = 1 if _HAS_PIPELINE_MODE else 2


def _resident_blockspec(block_shape, index_map):
    """BlockSpec for a grid-constant operand, single-buffered when supported."""
    if _HAS_PIPELINE_MODE:
        return pl.BlockSpec(block_shape, index_map, pipeline_mode=pl.Buffered(1))
    return pl.BlockSpec(block_shape, index_map)


def _vmem_budget_bytes():
    """Per-TensorCore VMEM budget: HW capacity minus ~15% compiler headroom."""
    cap = 64 << 20  # conservative fallback == v7x per-TC physical VMEM
    try:
        info = pltpu.get_tpu_info()
        cap = int(getattr(info, "vmem_capacity_bytes", cap))
    except Exception:
        pass
    return int(cap * 0.85)  # ~54 MiB on v7x, ~109 MiB on v5e/v6e


def _residual_resident_kernel(x_ref, w_ref, b_ref, o_ref, *, mxu_dtype):
    # x_ref: (TM, Hp) streamed   w_ref: (Hp, Hp) resident   b_ref: (1, Hp) resident
    x = x_ref[...]
    y = jnp.dot(x.astype(mxu_dtype), w_ref[...],
                preferred_element_type=jnp.float32)             # MXU, f32 accumulate
    o_ref[...] = (x.astype(jnp.float32) + y + b_ref[...]).astype(o_ref.dtype)


def _residual_nk_kernel(x_ref, w_ref, b_ref, o_ref, acc_ref, *, mxu_dtype):
    # grid (m, n, k): x_ref (TM, TK), w_ref (TK, TN), b_ref (1, TN), o_ref (TM, TN)
    n = pl.program_id(1)
    k = pl.program_id(2)

    @pl.when(k == 0)
    def _():
        acc_ref[...] = jnp.zeros_like(acc_ref)

    x = x_ref[...]
    acc_ref[...] += jnp.dot(x.astype(mxu_dtype), w_ref[...],
                            preferred_element_type=jnp.float32)

    # TK == TN and W is square, so the diagonal K tile of x is exactly the
    # N-column slice needed for the residual: no extra x HBM traffic.
    @pl.when(k == n)
    def _():
        acc_ref[...] += x.astype(jnp.float32)

    @pl.when(k == pl.num_programs(2) - 1)
    def _():
        o_ref[...] = (acc_ref[...] + b_ref[...]).astype(o_ref.dtype)


def residual_linear(x, w, b, *, mxu_dtype=jnp.bfloat16, out_dtype=None,
                    _force_nk=False, _nk_tile=None):
    """out = x + (x @ w + b), fused in a single Pallas TPU kernel.

    x: (B, S, H), w: (H, H), b: (H,).
    mxu_dtype: operand dtype fed to the MXU (bf16 is the native fast path on
               v5e/v6e/v7x); accumulation / bias / residual stay float32.
    out_dtype: stored output dtype (default x.dtype); pass jnp.bfloat16 to
               halve writeback HBM traffic in bf16 surroundings.
    """
    B, S, H = x.shape
    R = B * S
    out_dtype = x.dtype if out_dtype is None else out_dtype

    Hp = _round_up(H, 128)                 # lane-dense hidden dim
    x2 = x.reshape(R, H)
    if Hp != H:
        # Only the lane dim is padded; rows stay unpadded (Pallas masks the
        # partial edge row block and its writes never reach out_shape).
        x2 = jnp.pad(x2, ((0, 0), (0, Hp - H)))
    wp = (w if Hp == H else jnp.pad(w, ((0, Hp - H), (0, Hp - H)))).astype(mxu_dtype)
    bp = (b if Hp == H else jnp.pad(b, (0, Hp - H))).reshape(1, Hp).astype(jnp.float32)

    w_item = jnp.dtype(mxu_dtype).itemsize
    x_item = jnp.dtype(x2.dtype).itemsize
    out_item = jnp.dtype(out_dtype).itemsize
    budget = _vmem_budget_bytes()

    # Resident-W cost honours the actual buffer count (1 if Buffered(1) works).
    resident_w_bytes = _RESIDENT_BUFS * (Hp * Hp * w_item + Hp * 4)
    per_row_bytes = 2 * Hp * x_item + 2 * Hp * out_item   # dbl-buffered x + out

    use_resident = (not _force_nk) and (resident_w_bytes + 256 * per_row_bytes <= budget)

    flops = 2 * R * Hp * Hp + 2 * R * Hp

    if use_resident:
        # ---------------- resident-W fast path ------------------------------
        # TM: x tile >= ~2 MiB (amortize grid-step overhead), capped by the
        # VMEM budget, and capped so non-trivial R gets >= 2 row tiles (v7x
        # megacore via dimension_semantics=("parallel",)).
        tm = max(512, _round_up((2 << 20) // (Hp * x_item), 8))
        tm = min(tm, 4096)
        tm_budget = (budget - resident_w_bytes) // per_row_bytes
        tm = min(tm, max(8, tm_budget // 8 * 8))
        if R > 8:
            tm = min(tm, _round_up(pl.cdiv(R, 2), 8))
        tm = max(8, min(tm, _round_up(R, 8)))
        grid_m = pl.cdiv(R, tm)

        vmem_needed = resident_w_bytes + tm * per_row_bytes
        vmem_limit = int(min(budget, max(32 << 20, int(vmem_needed * 1.25))))

        kernel = functools.partial(_residual_resident_kernel, mxu_dtype=mxu_dtype)
        out2 = pl.pallas_call(
            kernel,
            out_shape=jax.ShapeDtypeStruct((R, Hp), out_dtype),
            grid_spec=pltpu.PrefetchScalarGridSpec(
                num_scalar_prefetch=0,
                grid=(grid_m,),
                in_specs=[
                    pl.BlockSpec((tm, Hp), lambda i: (i, 0)),       # x: streamed
                    _resident_blockspec((Hp, Hp), lambda i: (0, 0)),  # W: resident
                    _resident_blockspec((1, Hp), lambda i: (0, 0)),   # b: resident
                ],
                out_specs=pl.BlockSpec((tm, Hp), lambda i: (i, 0)),
            ),
            compiler_params=pltpu.CompilerParams(
                dimension_semantics=("parallel",),
                vmem_limit_bytes=vmem_limit,
            ),
            cost_estimate=pl.CostEstimate(
                flops=flops,
                transcendentals=0,
                bytes_accessed=R * Hp * (x_item + out_item) + Hp * Hp * w_item + Hp * 4,
            ),
        )(x2, wp, bp)
    else:
        # ---------------- K/N-tiled fallback (large H / small VMEM) ---------
        tn = 128
        for cand in ((_nk_tile,) if _nk_tile else (1024, 512, 256, 128)):
            if cand and Hp % cand == 0:
                tn = cand
                break
        tk = tn                                    # square W: TK == TN required

        def nk_vmem(tm_):
            return (2 * tm_ * tk * x_item          # x tile (double-buffered)
                    + 2 * tk * tn * w_item         # W tile (double-buffered)
                    + 2 * tn * 4                   # b tile
                    + 2 * tm_ * tn * out_item      # out tile (double-buffered)
                    + tm_ * tn * 4)                # f32 accumulator scratch

        tm = 512
        while tm > 8 and nk_vmem(tm) > budget:
            tm //= 2
        tm = max(8, min(tm, _round_up(R, 8)))
        grid = (pl.cdiv(R, tm), Hp // tn, Hp // tk)

        vmem_limit = int(min(budget, max(32 << 20, int(nk_vmem(tm) * 1.25))))

        kernel = functools.partial(_residual_nk_kernel, mxu_dtype=mxu_dtype)
        out2 = pl.pallas_call(
            kernel,
            out_shape=jax.ShapeDtypeStruct((R, Hp), out_dtype),
            grid_spec=pltpu.PrefetchScalarGridSpec(
                num_scalar_prefetch=0,
                grid=grid,
                in_specs=[
                    pl.BlockSpec((tm, tk), lambda m, n, k: (m, k)),   # x
                    pl.BlockSpec((tk, tn), lambda m, n, k: (k, n)),   # W
                    pl.BlockSpec((1, tn), lambda m, n, k: (0, n)),    # b
                ],
                out_specs=pl.BlockSpec((tm, tn), lambda m, n, k: (m, n)),
                scratch_shapes=[pltpu.VMEM((tm, tn), jnp.float32)],
            ),
            compiler_params=pltpu.CompilerParams(
                dimension_semantics=("parallel", "parallel", "arbitrary"),
                vmem_limit_bytes=vmem_limit,
            ),
            cost_estimate=pl.CostEstimate(
                flops=flops,
                transcendentals=0,
                bytes_accessed=(R * Hp * x_item * (Hp // tn)   # x re-read per N tile
                                + Hp * Hp * w_item
                                + R * Hp * out_item + Hp * 4),
            ),
        )(x2, wp, bp)

    out = out2 if Hp == H else out2[:, :H]
    return out.reshape(B, S, H)


if __name__ == "__main__":
    key = jax.random.PRNGKey(0)
    kx, kw, kb, kx2, kw2, kb2 = jax.random.split(key, 6)

    # --- small canonical shapes: resident-W path -----------------------------
    B, S, H = 2, 8, 32
    x = jax.random.normal(kx, (B, S, H), dtype=jnp.float32)
    bound = 1.0 / (H ** 0.5)        # nn.Linear-style uniform init scale
    w = jax.random.uniform(kw, (H, H), minval=-bound, maxval=bound, dtype=jnp.float32)
    b = jax.random.uniform(kb, (H,), minval=-bound, maxval=bound, dtype=jnp.float32)
    ref = x + (jnp.einsum("bsh,hk->bsk", x, w) + b)

    # f32 MXU path: matches the PyTorch module's numerics tightly.
    out_f32 = residual_linear(x, w, b, mxu_dtype=jnp.float32)
    jax.block_until_ready(out_f32)
    assert jnp.allclose(out_f32, ref, atol=1e-5, rtol=1e-5), "f32 mismatch vs reference"

    # default bf16 MXU path (native fast path on v5e/v6e/v7x): looser tolerance.
    out_bf16 = residual_linear(x, w, b)
    jax.block_until_ready(out_bf16)
    assert jnp.allclose(out_bf16, ref, atol=5e-2, rtol=5e-2), "bf16 mismatch vs reference"

    # --- exercise the K/N-tiled fallback path (forced, small tiles) ----------
    H2 = 256
    x2 = jax.random.normal(kx2, (B, S, H2), dtype=jnp.float32)
    bound2 = 1.0 / (H2 ** 0.5)
    w2 = jax.random.uniform(kw2, (H2, H2), minval=-bound2, maxval=bound2, dtype=jnp.float32)
    b2 = jax.random.uniform(kb2, (H2,), minval=-bound2, maxval=bound2, dtype=jnp.float32)
    ref2 = x2 + (jnp.einsum("bsh,hk->bsk", x2, w2) + b2)

    out_nk = residual_linear(x2, w2, b2, mxu_dtype=jnp.float32,
                             _force_nk=True, _nk_tile=128)
    jax.block_until_ready(out_nk)
    assert jnp.allclose(out_nk, ref2, atol=1e-4, rtol=1e-4), "NK-path mismatch vs reference"

    # TODO(synk): Residual wraps an arbitrary fn; only the canonical
    # fn = nn.Linear(H, H) is fused here — other fn choices need their own kernels.
    print("KERNEL_OK")
</pallas_src>

<mosaic_0001>
module attributes {stable_mosaic.version = 11 : i64} {
  func.func @_residual_resident_kernel(%arg0: i32, %arg1: memref<8x128xf32, #tpu.memory_space<vmem>>, %arg2: memref<128x128xf32, #tpu.memory_space<vmem>>, %arg3: memref<1x128xf32, #tpu.memory_space<vmem>>, %arg4: memref<8x128xf32, #tpu.memory_space<vmem>>) attributes {dimension_semantics = [#tpu.dimension_semantics<parallel>], iteration_bounds = array<i64: 2>, scalar_prefetch = 0 : i64, scratch_operands = 0 : i64, tpu.core_type = #tpu.core_type<tc>, window_params = [{transform_indices = @transform_0, window_bounds = array<i64: 8, 128>}, {pipeline_mode = #tpu.pipeline_mode<synchronous>, transform_indices = @transform_1, window_bounds = array<i64: 128, 128>}, {pipeline_mode = #tpu.pipeline_mode<synchronous>, transform_indices = @transform_2, window_bounds = array<i64: 1, 128>}, {transform_indices = @transform_3, window_bounds = array<i64: 8, 128>}]} {
    %c0 = arith.constant 0 : index
    %c0_0 = arith.constant 0 : index
    %0 = vector.load %arg1[%c0, %c0_0] : memref<8x128xf32, #tpu.memory_space<vmem>>, vector<8x128xf32>
    %c0_1 = arith.constant 0 : index
    %c0_2 = arith.constant 0 : index
    %1 = vector.load %arg2[%c0_1, %c0_2] : memref<128x128xf32, #tpu.memory_space<vmem>>, vector<128x128xf32>
    %cst = arith.constant dense<0.000000e+00> : vector<8x128xf32>
    %2 = tpu.matmul %0, %1, %cst {dimension_numbers = #tpu.dot_dimension_numbers<[1], [0], [0], [1], [0, 0, 1, 1], [], []>} : vector<8x128xf32>, vector<128x128xf32>, vector<8x128xf32> -> vector<8x128xf32>
    %3 = arith.addf %0, %2 : vector<8x128xf32>
    %c0_3 = arith.constant 0 : index
    %c0_4 = arith.constant 0 : index
    %4 = vector.load %arg3[%c0_3, %c0_4] : memref<1x128xf32, #tpu.memory_space<vmem>>, vector<1x128xf32>
    %5 = vector.broadcast %4 : vector<1x128xf32> to vector<8x128xf32>
    %6 = arith.addf %3, %5 : vector<8x128xf32>
    %c0_5 = arith.constant 0 : index
    %c0_6 = arith.constant 0 : index
    %7 = vector.load %arg4[%c0_5, %c0_6] : memref<8x128xf32, #tpu.memory_space<vmem>>, vector<8x128xf32>
    tpu.vector_store %arg4[%c0_5, %c0_6], %6 {strides = array<i32>} : memref<8x128xf32, #tpu.memory_space<vmem>>, vector<8x128xf32>,
    return
  }
  func.func @transform_0(%arg0: i32) -> (i32, i32) {
    %c0_i32 = arith.constant 0 : i32
    %c0_i32_0 = arith.constant 0 : i32
    return %arg0, %c0_i32 : i32, i32
  }
  func.func @transform_1(%arg0: i32) -> (i32, i32) {
    %c0_i32 = arith.constant 0 : i32
    %c0_i32_0 = arith.constant 0 : i32
    %c0_i32_1 = arith.constant 0 : i32
    return %c0_i32, %c0_i32_0 : i32, i32
  }
  func.func @transform_2(%arg0: i32) -> (i32, i32) {
    %c0_i32 = arith.constant 0 : i32
    %c0_i32_0 = arith.constant 0 : i32
    %c0_i32_1 = arith.constant 0 : i32
    return %c0_i32, %c0_i32_0 : i32, i32
  }
  func.func @transform_3(%arg0: i32) -> (i32, i32) {
    %c0_i32 = arith.constant 0 : i32
    %c0_i32_0 = arith.constant 0 : i32
    return %arg0, %c0_i32 : i32, i32
  }
}

</mosaic_0001>

<bundles_post_ra>
// kernel: tpu_custom_call.1
= control target key start
LH: loop header
LB: loop body
LE: loop exit
PB: predicated region body
PF: predicated region fallthrough
CT: control target
= control target key end

     0   :  { %8 = vsyncpa [#allocation3], 0  ;;  %s835_s0 = inlined_call_operand.hbm [shape: f32[16,128], index: 0, kind: input, shape index: {}]   ;;  %s836_s1 = inlined_call_operand.hbm [shape: f32[128,128], index: 1, kind: input, shape index: {}]   ;;  %s837_s2 = inlined_call_operand.vmem [shape: f32[1,128], index: 2, kind: input, shape index: {}]   ;;  %s838_s3 = inlined_call_operand.hbm [shape: f32[16,128], index: 3, kind: output, shape index: {}]  }
   0x1   :  { %10 = vsyncpa [#allocation3 + $0x1], 0 }
   0x2   :  { %11 = vsyncpa [#allocation6], 0 }
   0x3   :  { %12 = vsyncpa [#allocation4], 0 }
   0x4   :  { %14 = vsyncpa [#allocation4 + $0x1], 0  ;;  %s671_s12 = smov 0   ;;  %s673_s13 = smov 0  }
   0x5   :  { %s675_s14 = smov 0   ;;  %s677_s15 = smov 0  }
   0x6 LB: > { %s692_s16 = sadd.s32 4294967295, %s642_s15   ;;  %s392_s17 = sadd.s32 4294967294, %s642_s15   ;;  %s642_s15 = sphi %s677_s15, %s860_s15   ;;  %s638_s14 = sphi %s675_s14, %s859_s14   ;;  %s634_s13 = sphi %s673_s13, %s858_s13   ;;  %s630_s12 = sphi %s671_s12, %s857_s12  }
   0x7   : > { %p40_p0 = scmp.ne.s32.totalorder %s634_s13, %s630_s12  ;;  %p839_p1 = scmp.eq.s32.totalorder %s692_s16, 0 }
   0x8   : > { %p112_p3 = scmp.eq.s32.totalorder %s392_s17, 1  ;;  %p393_p5 = scmp.ge.s32.totalorder %s642_s15, 1 }
   0x9   : > { %p701_p4 = por %p839_p1, %p40_p0  ;;  %p119_p7 = scmp.lt.s32.totalorder %s642_s15, 3 }
   0xa   : > { %p706_p6 = por %p112_p3, %p40_p0  ;;  %s644_s21 = smov [#allocation5]  }
   0xb   : > { %s843_s18 = scalar_select %p701_p4, 1, 0 }
   0xc   : > { %s844_s19 = scalar_select %p706_p6, 1, 0 }
   0xd   : > { %p711_p8 = pnand %p393_p5, %p119_p7  ;;  %s131_s22 = sshll.u32 %s644_s21, 4  ;;  %s132_s22 = int_to_ptr.vmem [resolvable:$true] %s131_s22 }
   0xe   : > { %s725_s24 = sadd.s32 1, %s642_s15   ;;  %s27_s25 = sadd.s32 1, %s638_s14 }
   0xf   : > { %s845_s20 = scalar_select %p711_p8, 1, 0 }
  0x10   : > { %p467_p9 = pneg %p711_p8  ;;  %s24_s26 = ssub.s32 %s642_s15, %s725_s24 }
  0x11   : > { %s531_s27 = scalar_lea.vmem %s132_s22, 2048  ;;  %p539_p5 = scmp.lt.s32.totalorder %s132_s22, %s132_s22 }
  0x12   : > { %p720_p11 = pnand %p467_p9, %p839_p1  ;;  %p532_p13 = scmp.ne.s32.totalorder %s132_s22, %s531_s27 }
  0x13   : > { %p540_p7 = scmp.lt.s32.totalorder %s531_s27, %s531_s27 }
  0x14   : > { %p522_p12 = pneg %p720_p11 }
  0x15   : > { %p541_p10 = por %p540_p7, %p539_p5 }
  0x16   : > { %p534_p0 = pnand %p532_p13, %p522_p12 }
  0x18   : > { %p535_p3 = pneg %p534_p0 }
  0x1a   : > { %p542_p2 = pnand %p541_p10, %p535_p3 }
  0x1c   : > { %545 = shalt.err (!%p542_p2)
}
  0x1d   : > { %s645_s28 = smov 128   ;;  %s646_s29 = smov 8  }
  0x1e   : > { %470 = dma.hbm_to_vmem [thread:$0]  (!%p720_p11), %s836_s1, 2048, %s132_s22, [#allocation6], %s645_s28, %s645_s28, %s646_s29  }
  0x1f   : > { %p25_p9 = scmp.eq.s32.totalorder %s24_s26, 0  ;;  %p34_p12 = scmp.ne.s32.totalorder %s638_s14, %s634_s13 }
  0x20   : > { %p35_p10 = scmp.eq.s32.totalorder %s642_s15, 0  ;;  %p480_p2 = scmp.lt.s32.totalorder %s642_s15, 2 }
  0x21   : > { %s742_s5 = scalar_select %p25_p9, %s638_s14, %s27_s25  }
  0x22   : > { %p36_p13 = por %p35_p10, %p34_p12  ;;  %p847_p0 = scmp.eq.s32.totalorder %s692_s16, 1 }
  0x23   : > { %s148_s7 = sand.u32 1, %s638_s14   ;;  %s397_s8 = sshll.u32 %s642_s15, 7 }
  0x24   : > { %p746_p3 = por %p847_p0, %p34_p12  ;;  %s396_s9 = sshll.u32 %s148_s7, 3 }
  0x25   : > { %s755_s17 = scalar_lea.hbm %s835_s0, %s397_s8  ;;  %s152_s21 = scalar_lea.vmem [#allocation2], %s396_s9 }
  0x26   : > { %s848_s6 = scalar_select %p746_p3, 1, 0 }
  0x27   : > { %s159_s22 = sshll.u32 %s152_s21, 4  ;;  %p757_p11 = pnand %p480_p2, %p36_p13  ;;  %s160_s22 = int_to_ptr.vmem [resolvable:$true] %s159_s22 }
  0x28   : > { %s149_s25 = scalar_lea.sflag [#allocation3], %s148_s7  ;;  %s546_s26 = scalar_lea.hbm %s755_s17, 128 }
  0x29   : > { %p547_p5 = scmp.ne.s32.totalorder %s755_s17, %s546_s26  ;;  %p548_p7 = pneg %p757_p11 }
  0x2a   : > { %s551_s29 = scalar_lea.hbm %s835_s0, 256  ;;  %p552_p10 = scmp.lt.s32.totalorder %s755_s17, %s835_s0 }
  0x2b   : > { %p549_p9 = pnand %p548_p7, %p547_p5  ;;  %p553_p2 = scmp.lt.s32.totalorder %s551_s29, %s546_s26 }
  0x2d   : > { %p550_p12 = pneg %p549_p9  ;;  %p554_p13 = por %p553_p2, %p552_p10 }
  0x2f   : > { %p555_p0 = pnand %p554_p13, %p550_p12 }
  0x31   : > { %558 = shalt.err (!%p555_p0)
}
  0x32   : > { %s559_s8 = scalar_lea.vmem %s160_s22, 128  ;;  %s647_s7 = smov [#allocation2]  }
  0x33   : > { %p560_p1 = scmp.ne.s32.totalorder %s160_s22, %s559_s8  ;;  %s564_s9 = sshll.u32 %s647_s7, 4  ;;  %s565_s9 = int_to_ptr.vmem [resolvable:$false] %s564_s9 }
  0x34   : > { %s566_s10 = scalar_lea.vmem %s565_s9, 256  ;;  %p567_p5 = scmp.lt.s32.totalorder %s160_s22, %s565_s9 }
  0x35   : > { %p562_p6 = pnand %p560_p1, %p548_p7  ;;  %p568_p9 = scmp.lt.s32.totalorder %s566_s10, %s559_s8 }
  0x37   : > { %p563_p3 = pneg %p562_p6  ;;  %p569_p4 = por %p568_p9, %p567_p5 }
  0x39   : > { %p570_p8 = pnand %p569_p4, %p563_p3 }
  0x3b   : > { %573 = shalt.err (!%p570_p8)
}
  0x3c   : > { %474 = dma.hbm_to_vmem [thread:$0]  (!%p757_p11), %s755_s17, 128, %s160_s22, %s149_s25  }
  0x3d   : > { %p850_p12 = scmp.ne.s32.totalorder %s845_s20, 0 }
  0x3e   : > { %s778_s11 = sand.u32 (!%p850_p12), 1, %s634_s13   ;;  %p851_p1 = scmp.ne.s32.totalorder (!%p850_p12), %s843_s18, 0 }
  0x3f   : > { %168 = sbr.rel (%p850_p12) target bundleno = 315 (0x13b), region = 32  ;;  %s399_s21 = sshll.u32 (!%p850_p12), %s778_s11, 3 }
  0x40   : > { %s171_s26 = scalar_lea.sflag (!%p850_p12), [#allocation3], %s778_s11  ;;  %s784_s27 = scalar_lea.vmem (!%p850_p12), [#allocation2], %s399_s21 }
  0x44   : > { %617 = dma.done.wait (%p851_p1), %s171_s26, 128  }
  0x45   : > { %619 = vsyncadd (%p851_p1), %s171_s26, 4294967168  ;;  %p852_p4 = scmp.eq.s32.totalorder %s692_s16, 0 }
  0x47   : > { %621 = dma.done.wait (%p852_p4), [#allocation6], 2048   ;;  %p853_p6 = pmov %p852_p4 }
  0x48   : > { %v648_v0 = vmov 0.0   ;;  %vm649_vm0 = vmmov 0   ;;  %v217_v1 = vld [vmem:[#allocation5 + $0x78] sm:$0xff]  ;;  %v216_v2 = vld [vmem:[#allocation5 + $0x70] sm:$0xff]  ;;  %v215_v3 = vld [vmem:[#allocation5 + $0x68] sm:$0xff]  ;;  %s404_s17 = sshll.u32 %s692_s16, 7 }
  0x49   : > { %623 = vsyncadd (%p853_p6), [#allocation6], 4294965248  ;;  %424 = vmatprep.subr.mxu0 %v648_v0  ;;  %456 = vmatprep.mubr.msk.f32.mxu0 %vm649_vm0, %v648_v0  ;;  %v214_v4 = vld [vmem:[#allocation5 + $0x60] sm:$0xff]  ;;  %v213_v5 = vld [vmem:[#allocation5 + $0x58] sm:$0xff]  ;;  %s200_s22 = scalar_lea.vmem [#allocation7], %s399_s21  ;;  %s310_s29 = scalar_lea.hbm %s838_s3, %s404_s17 }
  0x4a   : > { %425 = vmatpush3.msra.mxu0 %v217_v1  ;;  %v212_v6 = vld [vmem:[#allocation5 + $0x50] sm:$0xff]  ;;  %v211_v7 = vld [vmem:[#allocation5 + $0x48] sm:$0xff]  ;;  %v210_v8 = vld [vmem:[#allocation5 + $0x40] sm:$0xff]  ;;  %s312_s23 = sshll.u32 %s200_s22, 4  ;;  %s299_s30 = scalar_lea.sflag [#allocation4], %s778_s11  ;;  %s313_s23 = int_to_ptr.vmem [resolvable:$true] %s312_s23 }
  0x4b   : > { %426 = vmatprep.subr.mxu0 %v648_v0  ;;  %v209_v9 = vld [vmem:[#allocation5 + $0x38] sm:$0xff]  ;;  %v208_v10 = vld [vmem:[#allocation5 + $0x30] sm:$0xff]  ;;  %v207_v11 = vld [vmem:[#allocation5 + $0x28] sm:$0xff]  ;;  %s574_s4 = scalar_lea.vmem %s313_s23, 128  ;;  %p854_p3 = scmp.ne.s32.totalorder %s848_s6, 0 }
  0x4c   : > { %427 = vmatpush3.msra.mxu0 %v216_v2  ;;  %v206_v12 = vld [vmem:[#allocation5 + $0x20] sm:$0xff]  ;;  %v205_v13 = vld [vmem:[#allocation5 + $0x18] sm:$0xff]  ;;  %v204_v14 = vld [vmem:[#allocation5 + $0x10] sm:$0xff]  ;;  %p575_p8 = scmp.ne.s32.totalorder %s313_s23, %s574_s4  ;;  %s650_s8 = smov [#allocation7]  }
  0x4d   : > { %428 = vmatprep.subr.mxu0 %v648_v0  ;;  %v203_v15 = vld [vmem:[#allocation5 + $0x8] sm:$0xff]  ;;  %v202_v16 = vld [vmem:[#allocation5] sm:$0xff]  ;;  %v201_v17 = vld [vmem:[%s784_s27] sm:$0xff]  ;;  %s578_s16 = sshll.u32 %s650_s8, 4  ;;  %s579_s16 = int_to_ptr.vmem [resolvable:$false] %s578_s16 }
  0x4e   : > { %429 = vmatpush3.msra.mxu0 %v215_v3  ;;  %v402_v19 = vld [vmem:[%s837_s2] ss:$0 sm:$0xff]  ;;  %p576_p11 = pnand %p575_p8, %p854_p3  ;;  %s580_s7 = scalar_lea.vmem %s579_s16, 256 }
  0x4f   : > { %430 = vmatprep.subr.mxu0 %v648_v0  ;;  %p581_p10 = scmp.lt.s32.totalorder %s313_s23, %s579_s16  ;;  %p582_p2 = scmp.lt.s32.totalorder %s580_s7, %s574_s4 }
  0x50   : > { %431 = vmatpush3.msra.mxu0 %v214_v4  ;;  %p577_p7 = pneg %p576_p11 }
  0x51   : > { %432 = vmatprep.subr.mxu0 %v648_v0  ;;  %p583_p13 = por %p582_p2, %p581_p10 }
  0x52   : > { %433 = vmatpush3.msra.mxu0 %v213_v5 }
  0x53   : > { %434 = vmatprep.subr.mxu0 %v648_v0  ;;  %p584_p0 = pnand %p583_p13, %p577_p7 }
  0x54   : > { %435 = vmatpush3.msra.mxu0 %v212_v6 }
  0x55   : > { %436 = vmatprep.subr.mxu0 %v648_v0 }
  0x56   : > { %437 = vmatpush3.msra.mxu0 %v211_v7 }
  0x57   : > { %438 = vmatprep.subr.mxu0 %v648_v0 }
  0x58   : > { %439 = vmatpush3.msra.mxu0 %v210_v8 }
  0x59   : > { %440 = vmatprep.subr.mxu0 %v648_v0 }
  0x5a   : > { %441 = vmatpush3.msra.mxu0 %v209_v9 }
  0x5b   : > { %442 = vmatprep.subr.mxu0 %v648_v0 }
  0x5c   : > { %443 = vmatpush3.msra.mxu0 %v208_v10 }
  0x5d   : > { %444 = vmatprep.subr.mxu0 %v648_v0 }
  0x5e   : > { %445 = vmatpush3.msra.mxu0 %v207_v11 }
  0x5f   : > { %446 = vmatprep.subr.mxu0 %v648_v0 }
  0x60   : > { %447 = vmatpush3.msra.mxu0 %v206_v12 }
  0x61   : > { %448 = vmatprep.subr.mxu0 %v648_v0 }
  0x62   : > { %449 = vmatpush3.msra.mxu0 %v205_v13 }
  0x63   : > { %450 = vmatprep.subr.mxu0 %v648_v0 }
  0x64   : > { %451 = vmatpush3.msra.mxu0 %v204_v14 }
  0x65   : > { %452 = vmatprep.subr.mxu0 %v648_v0 }
  0x66   : > { %453 = vmatpush3.msra.mxu0 %v203_v15 }
  0x67   : > { %454 = vmatprep.subr.mxu0 %v648_v0 }
  0x68   : > { %455 = vmatpush3.msra.mxu0 %v202_v16 }
  0x69   : > { %457 = vmatmul.mubr.f32.vlgmr.msra.gmra.mxu0 %v201_v17 }
 0x129   : > { %v284_v18 = vpop.f32.mrf.mxu0 }
 0x12a   : > { %v288_v20 = vadd.f32 %v284_v18, %v201_v17 }
 0x12b   : > { %v458_v21 = vpop.f32.mrf.mxu0 }
 0x12c   : > { %v296_v22 = vadd.f32 %v402_v19, %v288_v20 }
 0x12e   : > { %297 = vst [vmem:[%s200_s22] sm:$0xff] %v296_v22 }
 0x12f   : > { %587 = shalt.err (!%p584_p0)
}
 0x130   : > { %s588_s9 = scalar_lea.hbm %s310_s29, 128  ;;  %s592_s21 = scalar_lea.hbm %s838_s3, 256 }
 0x131   : > { %p589_p5 = scmp.ne.s32.totalorder %s310_s29, %s588_s9  ;;  %p593_p1 = scmp.lt.s32.totalorder %s310_s29, %s838_s3 }
 0x132   : > { %p594_p4 = scmp.lt.s32.totalorder %s592_s21, %s588_s9 }
 0x133   : > { %p590_p9 = pnand %p589_p5, %p854_p3 }
 0x134   : > { %p595_p6 = por %p594_p4, %p593_p1 }
 0x135   : > { %p591_p12 = pneg %p590_p9 }
 0x137   : > { %p596_p8 = pnand %p595_p6, %p591_p12 }
 0x139   : > { %599 = shalt.err (!%p596_p8)
}
 0x13a   : > { %465 = dma.vmem_to_hbm [thread:$0]  (%p854_p3), %s313_s23, 128, %s310_s29, %s299_s30  }
 0x13b PF: > { %s324_s18 = sand.u32 1, %s630_s12   ;;  %p855_p11 = scmp.ne.s32.totalorder %s844_s19, 0 }
 0x13c   : > { %p856_p7 = scmp.ge.s32.totalorder %s642_s15, 2  ;;  %s325_s20 = scalar_lea.sflag [#allocation4], %s324_s18 }
 0x13e   : > { %p476_p10 = pnand %p856_p7, %p855_p11 }
 0x140   : > { %p477_p2 = pneg %p476_p10 }
 0x142   : > { %625 = dma.done.wait (%p477_p2), %s325_s20, 128  }
 0x143   : > { %627 = vsyncadd (%p477_p2), %s325_s20, 4294967168  ;;  %p17_p13 = scmp.ge.s32.totalorder %s725_s24, 4   ;;  %s857_s12 = smov %s634_s13 }
 0x144   : > { %s858_s13 = smov %s638_s14  ;;  %s859_s14 = smov %s742_s5 }
 0x145   : > { %s860_s15 = smov %s725_s24  ;;  %19 = sbr.rel (!%p17_p13) target bundleno = 6 (0x6), region = 81 }
 0x14a   :  { %330 = vsyncpa [#allocation3], 1 }
 0x14b   :  { %332 = vsyncpa [#allocation3 + $0x1], 1 }
 0x14c   :  { %333 = vsyncpa [#allocation6], 1 }
 0x14d   :  { %334 = vsyncpa [#allocation4], 1 }
 0x14e   :  { %336 = vsyncpa [#allocation4 + $0x1], 1 }

</bundles_post_ra>
